<compile_context>
chip_gen: v7x
topology: tpu7x:2x2x1
jax: 0.10.0
libtpu: 0.0.40
codegen_flags: <defaults>
</compile_context>

<pallas_src>
import functools

import jax
import jax.numpy as jnp
from jax.experimental import pallas as pl
from jax.experimental.pallas import tpu as pltpu


def _round_up(a, b):
    return (a + b - 1) // b * b


def build_block_diag_weight(weights):
    """Wbig[c*3 + u, s*9 + o*3 + v] = W_s[o, c] * delta(u, v), shape [3C, 9S].

    With X = x[..., 0].reshape(B, 3C) (a free, contiguous reshape),
    (X @ Wbig)[b, s*9 + o*3 + v] = sum_c W_s[o, c] * x[b, c, v, 0].
    Weights are static module parameters: build this once per weight update
    and pass it via `wbig=` to keep it out of the per-call path.
    """
    S, three, C = weights.shape
    assert three == 3
    eye3 = jnp.eye(3, dtype=weights.dtype)
    return jnp.einsum("soc,uv->cusov", weights, eye3).reshape(3 * C, 9 * S)


def _vn_rot_kernel(x_ref, w_ref, o_ref, *, precision):
    # x_ref: [TM, 3C], w_ref: [3C, 9S], o_ref: [S, TM, 9]
    # One MXU pass over the row tile, f32 accumulation.
    acc = jnp.dot(
        x_ref[...], w_ref[...],
        preferred_element_type=jnp.float32,
        precision=precision,
    )                                                   # [TM, 9S]
    S = o_ref.shape[0]
    for s in range(S):                                  # static, unrolled
        # 9-lane slice per sample; lane rotate + masked store ride XLU / vst
        # slots, which are not the binding resource of this mem-bound kernel.
        o_ref[s, :, :] = acc[:, s * 9:(s + 1) * 9].astype(o_ref.dtype)


def simple_rot_partial(
    x,
    weights,
    which_strict_rot="None",
    *,
    wbig=None,
    use_pallas=None,
    precision=None,
    single_buffer_weight=False,
):
    """
    x:       [B, C, 3, 1]  (point features, N_samples == 1)
    weights: [S, 3, C]     (S = rot_samples; each W_s is nn.Linear(C, 3).weight)
    returns: [S, B, 3, 3]
    """
    if which_strict_rot != "None":
        # TODO(synk): pc_utils.to_rotation_mat is an SVD projection with no clean
        # Pallas equivalent; only which_strict_rot == 'None' is implemented.
        raise NotImplementedError("only which_strict_rot='None' is supported")

    S, three, C = weights.shape
    B, Cx, V, Nlast = x.shape
    assert three == 3 and V == 3 and Nlast == 1 and Cx == C

    K = 3 * C        # contracted dim (channel x vector-dim, block-diag expanded)
    N = 9 * S        # output lanes per row: (sample, out-row, vector-dim)

    in_dtype = jnp.result_type(x.dtype, weights.dtype)
    out_dtype = in_dtype
    itemsize = jnp.dtype(in_dtype).itemsize
    out_itemsize = jnp.dtype(out_dtype).itemsize

    # Tiny-problem fallback: pallas_call launch overhead dominates tiny inputs.
    if use_pallas is None:
        use_pallas = (B * K * itemsize) >= (256 * 1024)
    if not use_pallas:
        return jnp.einsum("soc,bcv->sbov", weights, x[..., 0]).astype(out_dtype)

    # Contiguous (free) reshape of the input -- no HBM transpose / pad round trip.
    X = x[..., 0].reshape(B, K).astype(in_dtype)
    if wbig is None:
        wbig = build_block_diag_weight(weights)
    Wbig = wbig.astype(in_dtype)

    # Native sublane multiple for the second-minor block dim.
    sub_mult = 8 if itemsize >= 4 else (16 if itemsize == 2 else 32)

    # --- Row-tile sizing --------------------------------------------------
    # Per-buffered-row VMEM (lanes pad to 128):
    #   X block:  round_up(K, 128) * itemsize
    #   O block:  S * 128 * out_itemsize   (each (TM, 9) slab lane-pads to 128)
    # Double-buffered; Wbig resident (2 buffers unless single_buffer_weight).
    w_bufs = 1 if single_buffer_weight else 2
    w_bytes = w_bufs * _round_up(K, sub_mult) * _round_up(N, 128) * itemsize
    per_row = 2 * (_round_up(K, 128) * itemsize + S * 128 * out_itemsize)
    vmem_budget = 12 * 1024 * 1024      # fits v5e's 16 MiB scoped default w/ headroom
    tm_vmem = max(sub_mult,
                  max(0, vmem_budget - w_bytes) // per_row // sub_mult * sub_mult)
    # Keep >= ~8 grid steps when B is large (v7x: >= 4 per TensorCore so both
    # cores get double-buffer overlap), but never below 1024 rows so per-step
    # DMA dwarfs the ~0.35 us fixed grid-step overhead on v5e/v6e.
    tm_grid = max(_round_up(pl.cdiv(B, 8), sub_mult), 1024)
    TM = min(tm_vmem, tm_grid, _round_up(B, sub_mult))
    grid = (pl.cdiv(B, TM),)

    if single_buffer_weight:
        # v7x VMEM headroom: the weight's index_map is constant, so it never
        # needs a second pipeline buffer.  Opt-in.
        w_spec = pl.BlockSpec((K, N), lambda i: (0, 0),
                              pipeline_mode=pl.Buffered(1))
    else:
        w_spec = pl.BlockSpec((K, N), lambda i: (0, 0))

    cost = pl.CostEstimate(
        flops=2 * B * K * N,
        transcendentals=0,
        bytes_accessed=itemsize * (B * K + K * N) + out_itemsize * S * B * 9,
    )

    kernel = functools.partial(_vn_rot_kernel, precision=precision)

    out = pl.pallas_call(
        kernel,
        out_shape=jax.ShapeDtypeStruct((S, B, 9), out_dtype),
        grid=grid,
        in_specs=[
            pl.BlockSpec((TM, K), lambda i: (i, 0)),     # X: tiled rows, ragged last block
            w_spec,                                      # Wbig: resident across the grid
        ],
        out_specs=pl.BlockSpec((S, TM, 9), lambda i: (0, i, 0)),
        compiler_params=pltpu.CompilerParams(
            dimension_semantics=("parallel",),           # megacore split on v7x
            vmem_limit_bytes=32 * 1024 * 1024,
        ),
        cost_estimate=cost,
    )(X, Wbig)

    # (S, B, 9) is already the [rot_samples, B, 3, 3] memory layout: free reshape.
    return out.reshape(S, B, 3, 3)


if __name__ == "__main__":
    # Small deterministic problem: batch=2, in_ch=32, vector dim=3, N_samples=1,
    # rot_samples=5, which_strict_rot='None'.
    B, C, S = 2, 32, 5
    key = jax.random.PRNGKey(0)
    kx, kw = jax.random.split(key)

    x = jax.random.normal(kx, (B, C, 3, 1), dtype=jnp.float32)
    # nn.Linear(in_ch, 3, bias=False) weight shape is [3, in_ch]; one per sample.
    bound = 1.0 / jnp.sqrt(jnp.float32(C))
    weights = jax.random.uniform(
        kw, (S, 3, C), dtype=jnp.float32, minval=-bound, maxval=bound
    )

    # Force the Pallas path (auto-dispatch would pick the XLA fallback at toy size).
    rot = simple_rot_partial(x, weights, which_strict_rot="None", use_pallas=True)
    rot = jax.block_until_ready(rot)

    # Pure-JAX reference for correctness.
    ref = jnp.einsum("soc,bcv->sbov", weights, x[..., 0])
    assert rot.shape == (S, B, 3, 3)
    assert jnp.allclose(rot, ref, atol=1e-5, rtol=1e-5)

    # Hoisted block-diagonal weight path (built once, reused across calls).
    wbig = build_block_diag_weight(weights)
    rot2 = jax.block_until_ready(
        simple_rot_partial(x, weights, wbig=wbig, use_pallas=True)
    )
    assert jnp.allclose(rot2, ref, atol=1e-5, rtol=1e-5)

    # Auto-dispatch (falls back to einsum at this size).
    rot_auto = jax.block_until_ready(simple_rot_partial(x, weights))
    assert jnp.allclose(rot_auto, ref, atol=1e-5, rtol=1e-5)

    print("KERNEL_OK")
</pallas_src>

<mosaic_0001>
module attributes {stable_mosaic.version = 11 : i64} {
  func.func @_vn_rot_kernel(%arg0: i32, %arg1: memref<8x96xf32, #tpu.memory_space<vmem>>, %arg2: memref<96x45xf32, #tpu.memory_space<vmem>>, %arg3: memref<5x8x9xf32, #tpu.memory_space<vmem>>) attributes {dimension_semantics = [#tpu.dimension_semantics<parallel>], iteration_bounds = array<i64: 1>, scalar_prefetch = 0 : i64, scratch_operands = 0 : i64, tpu.core_type = #tpu.core_type<tc>, window_params = [{transform_indices = @transform_0, window_bounds = array<i64: 8, 96>}, {pipeline_mode = #tpu.pipeline_mode<synchronous>, transform_indices = @transform_1, window_bounds = array<i64: 96, 45>}, {transform_indices = @transform_2, window_bounds = array<i64: 5, 8, 9>}]} {
    %c0 = arith.constant 0 : index
    %c0_0 = arith.constant 0 : index
    %0 = vector.load %arg1[%c0, %c0_0] : memref<8x96xf32, #tpu.memory_space<vmem>>, vector<8x96xf32>
    %c0_1 = arith.constant 0 : index
    %c0_2 = arith.constant 0 : index
    %1 = vector.load %arg2[%c0_1, %c0_2] : memref<96x45xf32, #tpu.memory_space<vmem>>, vector<96x45xf32>
    %cst = arith.constant dense<0.000000e+00> : vector<8x45xf32>
    %2 = tpu.matmul %0, %1, %cst {dimension_numbers = #tpu.dot_dimension_numbers<[1], [0], [0], [1], [0, 0, 1, 1], [], []>} : vector<8x96xf32>, vector<96x45xf32>, vector<8x45xf32> -> vector<8x45xf32>
    %3 = vector.extract_strided_slice %2 {offsets = [0, 0], sizes = [8, 9], strides = [1, 1]} : vector<8x45xf32> to vector<8x9xf32>
    %c0_3 = arith.constant 0 : index
    %c0_4 = arith.constant 0 : index
    %c0_5 = arith.constant 0 : index
    %4 = vector.load %arg3[%c0_3, %c0_4, %c0_5] : memref<5x8x9xf32, #tpu.memory_space<vmem>>, vector<1x8x9xf32>
    %5 = vector.shape_cast %4 : vector<1x8x9xf32> to vector<8x9xf32>
    %6 = vector.shape_cast %3 : vector<8x9xf32> to vector<1x8x9xf32>
    tpu.vector_store %arg3[%c0_3, %c0_4, %c0_5], %6 {strides = array<i32>} : memref<5x8x9xf32, #tpu.memory_space<vmem>>, vector<1x8x9xf32>,
    %7 = vector.extract_strided_slice %2 {offsets = [0, 9], sizes = [8, 9], strides = [1, 1]} : vector<8x45xf32> to vector<8x9xf32>
    %c1 = arith.constant 1 : index
    %c0_6 = arith.constant 0 : index
    %c0_7 = arith.constant 0 : index
    %8 = vector.load %arg3[%c1, %c0_6, %c0_7] : memref<5x8x9xf32, #tpu.memory_space<vmem>>, vector<1x8x9xf32>
    %9 = vector.shape_cast %8 : vector<1x8x9xf32> to vector<8x9xf32>
    %10 = vector.shape_cast %7 : vector<8x9xf32> to vector<1x8x9xf32>
    tpu.vector_store %arg3[%c1, %c0_6, %c0_7], %10 {strides = array<i32>} : memref<5x8x9xf32, #tpu.memory_space<vmem>>, vector<1x8x9xf32>,
    %11 = vector.extract_strided_slice %2 {offsets = [0, 18], sizes = [8, 9], strides = [1, 1]} : vector<8x45xf32> to vector<8x9xf32>
    %c2 = arith.constant 2 : index
    %c0_8 = arith.constant 0 : index
    %c0_9 = arith.constant 0 : index
    %12 = vector.load %arg3[%c2, %c0_8, %c0_9] : memref<5x8x9xf32, #tpu.memory_space<vmem>>, vector<1x8x9xf32>
    %13 = vector.shape_cast %12 : vector<1x8x9xf32> to vector<8x9xf32>
    %14 = vector.shape_cast %11 : vector<8x9xf32> to vector<1x8x9xf32>
    tpu.vector_store %arg3[%c2, %c0_8, %c0_9], %14 {strides = array<i32>} : memref<5x8x9xf32, #tpu.memory_space<vmem>>, vector<1x8x9xf32>,
    %15 = vector.extract_strided_slice %2 {offsets = [0, 27], sizes = [8, 9], strides = [1, 1]} : vector<8x45xf32> to vector<8x9xf32>
    %c3 = arith.constant 3 : index
    %c0_10 = arith.constant 0 : index
    %c0_11 = arith.constant 0 : index
    %16 = vector.load %arg3[%c3, %c0_10, %c0_11] : memref<5x8x9xf32, #tpu.memory_space<vmem>>, vector<1x8x9xf32>
    %17 = vector.shape_cast %16 : vector<1x8x9xf32> to vector<8x9xf32>
    %18 = vector.shape_cast %15 : vector<8x9xf32> to vector<1x8x9xf32>
    tpu.vector_store %arg3[%c3, %c0_10, %c0_11], %18 {strides = array<i32>} : memref<5x8x9xf32, #tpu.memory_space<vmem>>, vector<1x8x9xf32>,
    %19 = vector.extract_strided_slice %2 {offsets = [0, 36], sizes = [8, 9], strides = [1, 1]} : vector<8x45xf32> to vector<8x9xf32>
    %c4 = arith.constant 4 : index
    %c0_12 = arith.constant 0 : index
    %c0_13 = arith.constant 0 : index
    %20 = vector.load %arg3[%c4, %c0_12, %c0_13] : memref<5x8x9xf32, #tpu.memory_space<vmem>>, vector<1x8x9xf32>
    %21 = vector.shape_cast %20 : vector<1x8x9xf32> to vector<8x9xf32>
    %22 = vector.shape_cast %19 : vector<8x9xf32> to vector<1x8x9xf32>
    tpu.vector_store %arg3[%c4, %c0_12, %c0_13], %22 {strides = array<i32>} : memref<5x8x9xf32, #tpu.memory_space<vmem>>, vector<1x8x9xf32>,
    return
  }
  func.func @transform_0(%arg0: i32) -> (i32, i32) {
    %c0_i32 = arith.constant 0 : i32
    %c0_i32_0 = arith.constant 0 : i32
    return %arg0, %c0_i32 : i32, i32
  }
  func.func @transform_1(%arg0: i32) -> (i32, i32) {
    %c0_i32 = arith.constant 0 : i32
    %c0_i32_0 = arith.constant 0 : i32
    %c0_i32_1 = arith.constant 0 : i32
    return %c0_i32, %c0_i32_0 : i32, i32
  }
  func.func @transform_2(%arg0: i32) -> (i32, i32, i32) {
    %c0_i32 = arith.constant 0 : i32
    %c0_i32_0 = arith.constant 0 : i32
    %c0_i32_1 = arith.constant 0 : i32
    return %c0_i32, %arg0, %c0_i32_0 : i32, i32, i32
  }
}

</mosaic_0001>

<bundles_post_ra>
// kernel: tpu_custom_call.1
= control target key start
LH: loop header
LB: loop body
LE: loop exit
PB: predicated region body
PF: predicated region fallthrough
CT: control target
= control target key end

     0   :  { %7 = vsyncpa [#allocation3], 0  ;;  %v243_v2 = vmov 0.0|0.0   ;;  %vm244_vm0 = vmmov 0   ;;  %v245_v6 = vmov 0.0   ;;  %vm25_vm1 = vcmask 785408   ;;  %s320_s0 = inlined_call_operand.vmem [shape: f32[2,96], index: 0, kind: input, shape index: {}]   ;;  %s321_s1 = inlined_call_operand.vmem [shape: f32[96,45], index: 1, kind: input, shape index: {}]   ;;  %s322_s2 = inlined_call_operand.hbm [shape: f32[5,2,9], index: 2, kind: output, shape index: {}]  }
   0x1   :  { %v13_v0 = vld [vmem:[%s321_s1] sm:$0xff]  ;;  %v14_v1 = vld [vmem:[%s321_s1 + $0x8] sm:$0xff]  ;;  %208 = vmatprep.subr.bf16.mxu0 %v243_v2  ;;  %v15_v4 = vld [vmem:[%s321_s1 + $0x10] sm:$0xff]  ;;  %205 = vmatprep.mubr.msk.f32.mxu0 %vm244_vm0, %v245_v6  ;;  %vm99_vm2 = vcmask 72704   ;;  %s246_s7 = smov 101   ;;  %s247_s8 = smov 119  }
   0x2   :  { %v209_v3 = vpack.c.bf16 %v14_v1, %v13_v0  ;;  %v16_v5 = vld [vmem:[%s321_s1 + $0x18] sm:$0xff]  ;;  %v17_v8 = vld [vmem:[%s321_s1 + $0x20] sm:$0xff]  ;;  %v18_v9 = vld [vmem:[%s321_s1 + $0x28] sm:$0xff]  ;;  %s249_s9 = smov 110  }
   0x3   :  { %v212_v7 = vpack.c.bf16 %v16_v5, %v15_v4  ;;  %v215_v10 = vpack.c.bf16 %v18_v9, %v17_v8  ;;  %v19_v11 = vld [vmem:[%s321_s1 + $0x30] sm:$0xff]  ;;  %v20_v12 = vld [vmem:[%s321_s1 + $0x38] sm:$0xff]  ;;  %v21_v14 = vld [vmem:[%s321_s1 + $0x40] sm:$0xff] }
   0x4   :  { %210 = vmatpush3.bf16.msra.mxu0 %v209_v3  ;;  %v218_v13 = vpack.c.bf16 %v20_v12, %v19_v11  ;;  %v22_v15 = vld [vmem:[%s321_s1 + $0x48] sm:$0xff]  ;;  %v23_v17 = vld [vmem:[%s321_s1 + $0x50] sm:$0xff]  ;;  %v24_v18 = vld [vmem:[%s321_s1 + $0x58] sm:$0xff]  ;;  %s248_s1 = smov 92  }
   0x5   :  { %211 = vmatprep.subr.bf16.mxu0 %v243_v2  ;;  %v221_v16 = vpack.c.bf16 %v22_v15, %v21_v14  ;;  %v224_v19 = vpack.c.bf16 %v24_v18, %v23_v17  ;;  %v12_v20 = vld [vmem:[%s320_s0] sm:$0xff] }
   0x8   :  { %213 = vmatpush3.bf16.msra.mxu0 %v212_v7 }
   0x9   :  { %214 = vmatprep.subr.bf16.mxu0 %v243_v2 }
   0xc   :  { %216 = vmatpush3.bf16.msra.mxu0 %v215_v10 }
   0xd   :  { %217 = vmatprep.subr.bf16.mxu0 %v243_v2 }
  0x10   :  { %219 = vmatpush3.bf16.msra.mxu0 %v218_v13 }
  0x11   :  { %220 = vmatprep.subr.bf16.mxu0 %v243_v2 }
  0x14   :  { %222 = vmatpush3.bf16.msra.mxu0 %v221_v16 }
  0x15   :  { %223 = vmatprep.subr.bf16.mxu0 %v243_v2 }
  0x18   :  { %225 = vmatpush3.bf16.msra.mxu0 %v224_v19 }
  0x1b   :  { %206 = vmatmul.mubr.msk.f32.vlgmr.msra.gmra.mrb[0].mxu0 %vm25_vm1, %v12_v20 }
  0xee   :  { %v95_v21 = vpop.f32.mrb[0].mxu0 }
  0xef   :  { %112 = vrot.lane.b32.xlu1 %v95_v21, %s246_s7  ;;  %102 = vrot.lane.b32.xlu0 %v95_v21, %s247_s8  ;;  %v207_v22 = vpop.f32.mrb[1].mxu0  ;;  %100 = vst.msk [vmem:[#allocation2] sm:$0xff] %vm99_vm2, %v95_v21 }
  0xf3   :  { %117 = vrot.lane.b32.xlu1 %v95_v21, %s248_s1  ;;  %107 = vrot.lane.b32.xlu0 %v95_v21, %s249_s9 }
 0x161   :  { %v113_v23 = vpop.permute.xlu1 %112  ;;  %v103_v24 = vpop.permute.xlu0 %102 }
 0x162   :  { %116 = vst.msk [vmem:[#allocation2 + $0x18] sm:$0xff] %vm99_vm2, %v113_v23  ;;  %106 = vst.msk [vmem:[#allocation2 + $0x8] sm:$0xff] %vm99_vm2, %v103_v24 }
 0x165   :  { %v118_v25 = vpop.permute.xlu1 %117  ;;  %v108_v26 = vpop.permute.xlu0 %107 }
 0x166   :  { %121 = vst.msk [vmem:[#allocation2 + $0x20] sm:$0xff] %vm99_vm2, %v118_v25  ;;  %111 = vst.msk [vmem:[#allocation2 + $0x10] sm:$0xff] %vm99_vm2, %v108_v26 }
 0x167   :  { %126 = vsyncadd [#allocation3], 480  ;;  %s250_s0 = smov [#allocation2]   ;;  %s251_s11 = smov 128  }
 0x168   :  { %s143_s10 = sshll.u32 %s250_s0, 4  ;;  %150 = sst [smem:[#allocation5]] %s251_s11  ;;  %s144_s10 = int_to_ptr.vmem [resolvable:$true] %s143_s10 }
 0x169   :  { %s252_s12 = smov 32   ;;  %s253_s13 = smov 1  }
 0x16a   :  { %152 = sst [smem:[#allocation5 + $0x1]] %s252_s12  ;;  %s254_s14 = smov 2  }
 0x16b   :  { %154 = sst [smem:[#allocation5 + $0x2]] %s253_s13  ;;  %s255_s15 = smov [#allocation3]  }
 0x16c   :  { %156 = sst [smem:[#allocation5 + $0x3]] %s252_s12  ;;  %s256_s16 = smov [#allocation4]  }
 0x16d   :  { %158 = sst [smem:[#allocation5 + $0x4]] %s252_s12  ;;  %s257_s17 = smov 0  }
 0x16e   :  { %160 = sst [smem:[#allocation5 + $0x5]] %s254_s14 }
 0x16f   :  { %162 = dma.general %s144_s10, 160, %s322_s2, %s255_s15, %s256_s16, [#allocation5], %s257_s17, 0  }
 0x170   :  { %241 = dma.done.wait [#allocation3], 640  }
 0x171   :  { %242 = vsyncadd [#allocation3], 4294966656 }
 0x172   :  { %166 = vsyncpa [#allocation3], 1 }

</bundles_post_ra>
